<compile_context>
chip_gen: v7x
topology: tpu7x:2x2x1
jax: 0.10.0
libtpu: 0.0.40
codegen_flags: <defaults>
</compile_context>

<pallas_src>
import jax
import jax.numpy as jnp
from jax.experimental import pallas as pl
from jax.experimental.pallas import tpu as pltpu


# --------------------------------- helpers ----------------------------------
def _vmem_limit_bytes() -> int:
    """Per-generation scoped-VMEM budget (~3/4 of physical VMEM, clamped)."""
    try:
        cap = int(pltpu.get_tpu_info().vmem_capacity_bytes)
        return int(max(32 << 20, min((cap * 3) // 4, 100 << 20)))
    except Exception:
        return 48 << 20   # safe fallback on every generation incl. v7x (64 MiB physical)


def _row_tile(n: int, target: int, align: int = 16):
    """(tile, padded_n): cdiv-style tiling of a row axis with a zero-padded tail.
    align=16 keeps the second-minor block dim bf16-pack friendly."""
    target = max(align, (target // align) * align)
    tile = target if n >= target else ((n + align - 1) // align) * align
    n_pad = ((n + tile - 1) // tile) * tile
    return tile, n_pad


def _pad_rows(x, axis, n_pad):
    n = x.shape[axis]
    if n_pad == n:
        return x
    pads = [(0, 0)] * x.ndim
    pads[axis] = (0, n_pad - n)
    return jnp.pad(x, pads)


# ----------------------------- method == 'mlp' -------------------------------
def _mlp_kernel(x_ref, w_ref, b_ref, o_ref):
    # x: (Tm, D), w: (D, L), b: (1, L) f32  ->  o: (Tm, L) f32
    o_ref[...] = (jnp.dot(x_ref[...], w_ref[...], preferred_element_type=jnp.float32)
                  + b_ref[...])


def mlp_label_proj(x, w, b, *, compute_dtype=jnp.bfloat16, row_tile=512):
    """TimeDistributed(nn.Linear(D, L)): x (B, N, D), w (L, D), b (L,) -> (B, N, L) f32."""
    B, N, D = x.shape
    L = w.shape[0]
    M = B * N
    tm, Mp = _row_tile(M, row_tile)
    isz = jnp.dtype(compute_dtype).itemsize

    x2d = _pad_rows(x.reshape(M, D).astype(compute_dtype), 0, Mp)
    wt = w.T.astype(compute_dtype)                   # (D, L)
    b2 = b.reshape(1, L).astype(jnp.float32)

    cost = pl.CostEstimate(
        flops=2 * Mp * D * L, transcendentals=0,
        bytes_accessed=Mp * D * isz + D * L * isz + L * 4 + Mp * L * 4)

    out = pl.pallas_call(
        _mlp_kernel,
        out_shape=jax.ShapeDtypeStruct((Mp, L), jnp.float32),
        grid=(Mp // tm,),
        in_specs=[
            pl.BlockSpec((tm, D), lambda i: (i, 0)),
            pl.BlockSpec((D, L), lambda i: (0, 0)),
            pl.BlockSpec((1, L), lambda i: (0, 0)),
        ],
        out_specs=pl.BlockSpec((tm, L), lambda i: (i, 0)),
        compiler_params=pltpu.CompilerParams(
            dimension_semantics=("parallel",),
            vmem_limit_bytes=_vmem_limit_bytes()),
        cost_estimate=cost,
    )(x2d, wt, b2)
    # TODO(synk): if v5e profiling shows the single vst slot binding (small D), emit the tile
    # transposed (L, tm) lane-dense-in-M and fix the layout with a cheap transpose outside.
    return out[:M].reshape(B, N, L)


# --------------------------- method == 'biaffine' ----------------------------
def _biaffine_kernel(x1_ref, x2t_ref, w1_ref, wcol_ref, wrow_ref, ccb_ref, o_ref):
    # x1  : (1, Tn, D)   tile of span1 rows
    # x2t : (1, D, N2)   span2 for this batch element, pre-transposed (no in-kernel transpose)
    # w1  : (D, L*D)     w1[d, l*D + e] = W[l, d, e]        (main D x D bilinear block)
    # wcol: (D, L)       wcol[d, l]    = W[l, d, D]         (span1-side input-bias column)
    # wrow: (L, D)       wrow[l, e]    = W[l, D, e]         (span2-side input-bias row)
    # ccb : (L, 1) f32   ccb[l]        = W[l, D, D] + bias  (corner + scalar module bias)
    # o   : (1, L, Tn, N2) f32
    x1 = x1_ref[0]                        # (Tn, D)
    x2t = x2t_ref[0]                      # (D, N2)
    D = x1.shape[1]
    L = wrow_ref.shape[0]

    # stage 1: one wide MXU matmul: inter[n, l*D + e] = sum_d x1[n,d] * W[l,d,e]
    inter = jnp.dot(x1, w1_ref[...], preferred_element_type=jnp.float32)      # (Tn, L*D) f32
    inter_c = inter.astype(x2t.dtype)

    # rank-1 / rank-0 corrections replacing the ones-augmented columns of the bilinear form
    r1 = jnp.dot(x1, wcol_ref[...], preferred_element_type=jnp.float32)       # (Tn, L)
    r2 = (jnp.dot(wrow_ref[...], x2t, preferred_element_type=jnp.float32)
          + ccb_ref[...])                                                     # (L, N2)

    # stage 2: L lane-aligned (Tn, D) x (D, N2) matmuls.  L is an OUTER (untiled) axis of the
    # output block, so each o_ref[0, l] store is a full unmasked (Tn, N2) dense block store.
    for l in range(L):
        s = jnp.dot(inter_c[:, l * D:(l + 1) * D], x2t,
                    preferred_element_type=jnp.float32)                       # (Tn, N2)
        o_ref[0, l] = s + r1[:, l:l + 1] + r2[l:l + 1, :]


def biaffine_label_proj(span1, span2, w, bias, *, compute_dtype=jnp.bfloat16,
                        row_tile=128, flatten_output=True):
    """BilinearMatrixAttention(D, D, use_input_biases=True, label_dim=L).
    span1 (B, N1, D), span2 (B, N2, D), w (L, D+1, D+1), bias (1,).
    flatten_output=True returns the module contract (B, N1*N2, L); False returns the
    kernel-native lane-dense (B, L, N1, N2) so a downstream consumer can skip the extra
    HBM transpose pass of the layer's largest tensor."""
    B, N1, D = span1.shape
    _, N2, _ = span2.shape
    L = w.shape[0]
    tn, N1p = _row_tile(N1, row_tile)
    isz = jnp.dtype(compute_dtype).itemsize

    # activations: pad span1 rows to the tile grid; pre-transpose span2 -> (B, D, N2)
    s1 = _pad_rows(span1.astype(compute_dtype), 1, N1p)              # (B, N1p, D)
    s2t = jnp.transpose(span2, (0, 2, 1)).astype(compute_dtype)      # (B, D, N2)

    # static weight prep: split the (D+1)x(D+1) bilinear form into the DxD block plus rank-1
    # row/col corrections and the corner, so the kernel never sees ones-augmented activations
    # (the contraction K stays = D, MXU-aligned).
    w1 = jnp.transpose(w[:, :D, :D], (1, 0, 2)).reshape(D, L * D).astype(compute_dtype)
    wcol = jnp.transpose(w[:, :D, D], (1, 0)).astype(compute_dtype)   # (D, L)
    wrow = w[:, D, :D].astype(compute_dtype)                          # (L, D)
    ccb = (w[:, D, D] + bias[0]).reshape(L, 1).astype(jnp.float32)    # (L, 1)

    cost = pl.CostEstimate(
        flops=(2 * B * N1p * D * L * D + 2 * B * L * N1p * D * N2
               + 2 * B * N1p * D * L + 2 * B * L * D * N2),
        transcendentals=0,
        bytes_accessed=((B * N1p * D + B * D * N2 + D * L * D + 2 * L * D) * isz
                        + L * 4 + B * L * N1p * N2 * 4))

    out4 = pl.pallas_call(
        _biaffine_kernel,
        out_shape=jax.ShapeDtypeStruct((B, L, N1p, N2), jnp.float32),
        grid=(B, N1p // tn),
        in_specs=[
            pl.BlockSpec((1, tn, D), lambda b, i: (b, i, 0)),
            pl.BlockSpec((1, D, N2), lambda b, i: (b, 0, 0)),
            # constant-index weight blocks: DMA'd once and kept resident across the grid.
            # TODO(synk): on v7x, single-buffer these constant operands (pipeline_mode) and/or
            # add a grid axis over L*D / N2 if D*L*D or D*N2 no longer fits the 64 MiB VMEM.
            pl.BlockSpec((D, L * D), lambda b, i: (0, 0)),
            pl.BlockSpec((D, L), lambda b, i: (0, 0)),
            pl.BlockSpec((L, D), lambda b, i: (0, 0)),
            pl.BlockSpec((L, 1), lambda b, i: (0, 0)),
        ],
        out_specs=pl.BlockSpec((1, L, tn, N2), lambda b, i: (b, 0, i, 0)),
        compiler_params=pltpu.CompilerParams(
            dimension_semantics=("parallel", "parallel"),
            vmem_limit_bytes=_vmem_limit_bytes()),
        cost_estimate=cost,
    )(s1, s2t, w1, wcol, wrow, ccb)

    out4 = out4[:, :, :N1, :]
    if not flatten_output:
        return out4                                   # (B, L, N1, N2), lane-dense in N2
    # module contract: permute(0,2,3,1).view(B,-1,L).  With L << 128 the L-minor layout
    # cannot be stored lane-densely from inside the kernel, so one fused XLA transpose of the
    # result is the cheapest way to materialize the contract layout.
    return jnp.transpose(out4, (0, 2, 3, 1)).reshape(B, N1 * N2, L)


# ------------------------ method == 'biaffine_paired' ------------------------
def _biaffine_paired_kernel(x_ref, wflat_ref, wlin_ref, bb_ref, o_ref):
    # x: (Tm, 2h), wflat: (h, L*h) with wflat[i, l*h + j] = Wbil[l, i, j],
    # wlin: (2h, L), bb: (1, L) f32  ->  o: (Tm, L) f32
    h = wflat_ref.shape[0]
    L = bb_ref.shape[1]
    x = x_ref[...]
    x1 = x[:, :h]
    x2f = x[:, h:].astype(jnp.float32)

    # y[n, l*h + j] = sum_i x1[n,i] * Wbil[l,i,j]   (one wide MXU matmul)
    y = jnp.dot(x1, wflat_ref[...], preferred_element_type=jnp.float32)       # (Tm, L*h)
    # bilinear term: per-label VPU multiply + XLU lane reduction — no selector matmul and no
    # jnp.tile lane replication, so the MXU only runs the two real matmuls.
    cols = []
    for l in range(L):
        seg = y[:, l * h:(l + 1) * h] * x2f                                   # (Tm, h)
        cols.append(jnp.sum(seg, axis=-1, keepdims=True))                     # (Tm, 1)
    bil = jnp.concatenate(cols, axis=-1)                                      # (Tm, L)

    lin = jnp.dot(x, wlin_ref[...], preferred_element_type=jnp.float32)       # (Tm, L)
    o_ref[...] = bil + lin + bb_ref[...]


def biaffine_paired_label_proj(x, w_bil, b_bil, w_lin, *, compute_dtype=jnp.bfloat16,
                               row_tile=512):
    """nn.Bilinear(D//2, D//2, L, bias=True)(x1, x2) + Linear(D, L, bias=False)(x).
    x (B, N, D), w_bil (L, D//2, D//2), b_bil (L,), w_lin (L, D) -> (B, N, L) f32."""
    B, N, D = x.shape
    L, h, _ = w_bil.shape
    M = B * N
    tm, Mp = _row_tile(M, row_tile)
    isz = jnp.dtype(compute_dtype).itemsize

    x2d = _pad_rows(x.reshape(M, D).astype(compute_dtype), 0, Mp)
    wflat = jnp.transpose(w_bil, (1, 0, 2)).reshape(h, L * h).astype(compute_dtype)
    wlin = w_lin.T.astype(compute_dtype)              # (D, L)
    bb = b_bil.reshape(1, L).astype(jnp.float32)

    cost = pl.CostEstimate(
        flops=2 * Mp * h * L * h + 2 * Mp * D * L + 3 * Mp * L * h,
        transcendentals=0,
        bytes_accessed=(Mp * D + h * L * h + D * L) * isz + L * 4 + Mp * L * 4)

    out = pl.pallas_call(
        _biaffine_paired_kernel,
        out_shape=jax.ShapeDtypeStruct((Mp, L), jnp.float32),
        grid=(Mp // tm,),
        in_specs=[
            pl.BlockSpec((tm, D), lambda i: (i, 0)),
            pl.BlockSpec((h, L * h), lambda i: (0, 0)),
            pl.BlockSpec((D, L), lambda i: (0, 0)),
            pl.BlockSpec((1, L), lambda i: (0, 0)),
        ],
        out_specs=pl.BlockSpec((tm, L), lambda i: (i, 0)),
        compiler_params=pltpu.CompilerParams(
            dimension_semantics=("parallel",),
            vmem_limit_bytes=_vmem_limit_bytes()),
        cost_estimate=cost,
    )(x2d, wflat, wlin, bb)
    return out[:M].reshape(B, N, L)


# ---------------------------------- main -------------------------------------
if __name__ == "__main__":
    B, N, D, L = 2, 8, 32, 8          # batch, num span(-pair)s, inp_dim, label_dim
    key = jax.random.PRNGKey(0)
    ks = jax.random.split(key, 10)

    # deterministic synthetic parameters (shapes from the module's __init__)
    w_mlp = 0.05 * jax.random.normal(ks[0], (L, D), jnp.float32)               # Linear weight
    b_mlp = 0.05 * jax.random.normal(ks[1], (L,), jnp.float32)                 # Linear bias
    w_biaf = 0.05 * jax.random.normal(ks[2], (L, D + 1, D + 1), jnp.float32)   # bilinear attn weight
    b_biaf = 0.05 * jax.random.normal(ks[3], (1,), jnp.float32)                # scalar bias
    w_bil = 0.05 * jax.random.normal(ks[4], (L, D // 2, D // 2), jnp.float32)  # nn.Bilinear weight
    b_bil = 0.05 * jax.random.normal(ks[5], (L,), jnp.float32)                 # nn.Bilinear bias
    w_lin = 0.05 * jax.random.normal(ks[6], (L, D), jnp.float32)               # Linear (no bias)

    # deterministic inputs
    span_repr = jax.random.normal(ks[7], (B, N, D), jnp.float32)
    span1_repr = jax.random.normal(ks[8], (B, N, D), jnp.float32)
    span2_repr = jax.random.normal(ks[9], (B, N, D), jnp.float32)

    # --- pure-JAX f32 references ---
    ref_mlp = jnp.einsum('bnd,ld->bnl', span_repr, w_mlp) + b_mlp
    aug1 = jnp.concatenate([span1_repr, jnp.ones((B, N, 1), jnp.float32)], -1)
    aug2 = jnp.concatenate([span2_repr, jnp.ones((B, N, 1), jnp.float32)], -1)
    ref_biaf = jnp.einsum('bnd,lde,bme->blnm', aug1, w_biaf, aug2) + b_biaf[0]
    ref_biaf = jnp.transpose(ref_biaf, (0, 2, 3, 1)).reshape(B, N * N, L)
    x1_, x2_ = span_repr[..., :D // 2], span_repr[..., D // 2:]
    ref_bp = (jnp.einsum('bni,lij,bnj->bnl', x1_, w_bil, x2_) + b_bil
              + jnp.einsum('bnd,ld->bnl', span_repr, w_lin))

    # --- f32 kernel path: exact validation of the algorithm / decomposition ---
    out_mlp32 = jax.block_until_ready(
        mlp_label_proj(span_repr, w_mlp, b_mlp, compute_dtype=jnp.float32))
    out_biaf32 = jax.block_until_ready(
        biaffine_label_proj(span1_repr, span2_repr, w_biaf, b_biaf, compute_dtype=jnp.float32))
    out_bp32 = jax.block_until_ready(
        biaffine_paired_label_proj(span_repr, w_bil, b_bil, w_lin, compute_dtype=jnp.float32))
    assert out_mlp32.shape == (B, N, L)
    assert out_biaf32.shape == (B, N * N, L)
    assert out_bp32.shape == (B, N, L)
    assert jnp.allclose(out_mlp32, ref_mlp, rtol=1e-4, atol=1e-4)
    assert jnp.allclose(out_biaf32, ref_biaf, rtol=1e-4, atol=1e-4)
    assert jnp.allclose(out_bp32, ref_bp, rtol=1e-4, atol=1e-4)

    # --- default bf16 compute path (f32 accumulation): loose check vs f32 reference ---
    out_mlp = jax.block_until_ready(mlp_label_proj(span_repr, w_mlp, b_mlp))
    out_biaf = jax.block_until_ready(
        biaffine_label_proj(span1_repr, span2_repr, w_biaf, b_biaf))
    out_bp = jax.block_until_ready(
        biaffine_paired_label_proj(span_repr, w_bil, b_bil, w_lin))
    assert jnp.allclose(out_mlp, ref_mlp, rtol=5e-2, atol=5e-2)
    assert jnp.allclose(out_biaf, ref_biaf, rtol=5e-2, atol=5e-2)
    assert jnp.allclose(out_bp, ref_bp, rtol=5e-2, atol=5e-2)

    print("KERNEL_OK")
</pallas_src>

<mosaic_0001>
module attributes {stable_mosaic.version = 11 : i64} {
  func.func @_mlp_kernel(%arg0: i32, %arg1: memref<16x32xf32, #tpu.memory_space<vmem>>, %arg2: memref<32x8xf32, #tpu.memory_space<vmem>>, %arg3: memref<1x8xf32, #tpu.memory_space<vmem>>, %arg4: memref<16x8xf32, #tpu.memory_space<vmem>>) attributes {dimension_semantics = [#tpu.dimension_semantics<parallel>], iteration_bounds = array<i64: 1>, scalar_prefetch = 0 : i64, scratch_operands = 0 : i64, tpu.core_type = #tpu.core_type<tc>, window_params = [{transform_indices = @transform_0, window_bounds = array<i64: 16, 32>}, {pipeline_mode = #tpu.pipeline_mode<synchronous>, transform_indices = @transform_1, window_bounds = array<i64: 32, 8>}, {pipeline_mode = #tpu.pipeline_mode<synchronous>, transform_indices = @transform_2, window_bounds = array<i64: 1, 8>}, {transform_indices = @transform_3, window_bounds = array<i64: 16, 8>}]} {
    %c0 = arith.constant 0 : index
    %c0_0 = arith.constant 0 : index
    %0 = vector.load %arg1[%c0, %c0_0] : memref<16x32xf32, #tpu.memory_space<vmem>>, vector<16x32xf32>
    %c0_1 = arith.constant 0 : index
    %c0_2 = arith.constant 0 : index
    %1 = vector.load %arg2[%c0_1, %c0_2] : memref<32x8xf32, #tpu.memory_space<vmem>>, vector<32x8xf32>
    %cst = arith.constant dense<0.000000e+00> : vector<16x8xf32>
    %2 = tpu.matmul %0, %1, %cst {dimension_numbers = #tpu.dot_dimension_numbers<[1], [0], [0], [1], [0, 0, 1, 1], [], []>} : vector<16x32xf32>, vector<32x8xf32>, vector<16x8xf32> -> vector<16x8xf32>
    %c0_3 = arith.constant 0 : index
    %c0_4 = arith.constant 0 : index
    %3 = vector.load %arg3[%c0_3, %c0_4] : memref<1x8xf32, #tpu.memory_space<vmem>>, vector<1x8xf32>
    %4 = vector.broadcast %3 : vector<1x8xf32> to vector<16x8xf32>
    %5 = arith.addf %2, %4 : vector<16x8xf32>
    %c0_5 = arith.constant 0 : index
    %c0_6 = arith.constant 0 : index
    %6 = vector.load %arg4[%c0_5, %c0_6] : memref<16x8xf32, #tpu.memory_space<vmem>>, vector<16x8xf32>
    tpu.vector_store %arg4[%c0_5, %c0_6], %5 {strides = array<i32>} : memref<16x8xf32, #tpu.memory_space<vmem>>, vector<16x8xf32>,
    return
  }
  func.func @transform_0(%arg0: i32) -> (i32, i32) {
    %c0_i32 = arith.constant 0 : i32
    %c0_i32_0 = arith.constant 0 : i32
    return %arg0, %c0_i32 : i32, i32
  }
  func.func @transform_1(%arg0: i32) -> (i32, i32) {
    %c0_i32 = arith.constant 0 : i32
    %c0_i32_0 = arith.constant 0 : i32
    %c0_i32_1 = arith.constant 0 : i32
    return %c0_i32, %c0_i32_0 : i32, i32
  }
  func.func @transform_2(%arg0: i32) -> (i32, i32) {
    %c0_i32 = arith.constant 0 : i32
    %c0_i32_0 = arith.constant 0 : i32
    %c0_i32_1 = arith.constant 0 : i32
    return %c0_i32, %c0_i32_0 : i32, i32
  }
  func.func @transform_3(%arg0: i32) -> (i32, i32) {
    %c0_i32 = arith.constant 0 : i32
    %c0_i32_0 = arith.constant 0 : i32
    return %arg0, %c0_i32 : i32, i32
  }
}

</mosaic_0001>

<bundles_post_ra>
// kernel: tpu_custom_call.1
= control target key start
LH: loop header
LB: loop body
LE: loop exit
PB: predicated region body
PF: predicated region fallthrough
CT: control target
= control target key end

     0   :  { %vm27_vm0 = vcmask 261120   ;;  %vm109_vm1 = vcmask 64512   ;;  %s191_s1 = inlined_call_operand.vmem [shape: f32[32,8], index: 1, kind: input, shape index: {}]   ;;  %s192_s0 = inlined_call_operand.vmem [shape: f32[16,32], index: 0, kind: input, shape index: {}]   ;;  %s193_s2 = inlined_call_operand.vmem [shape: f32[1,8], index: 2, kind: input, shape index: {}]   ;;  %s194_s3 = inlined_call_operand.vmem [shape: f32[16,8], index: 3, kind: output, shape index: {}]  }
   0x1   :  { %v16_v0 = vld [vmem:[%s191_s1] sm:$0xff]  ;;  %v17_v1 = vld [vmem:[%s191_s1 + $0x8] sm:$0xff]  ;;  %v18_v2 = vld [vmem:[%s191_s1 + $0x10] sm:$0xff] }
   0x2   :  { %v136_v3 = vpack.c.bf16 %v17_v1, %v16_v0  ;;  %v19_v4 = vld [vmem:[%s191_s1 + $0x18] sm:$0xff]  ;;  %v14_v5 = vld [vmem:[%s192_s0] sm:$0xff]  ;;  %v15_v7 = vld [vmem:[%s192_s0 + $0x8] sm:$0xff] }
   0x3   :  { %v140_v6 = vpack.c.bf16 %v19_v4, %v18_v2  ;;  %133 = vmatprep.mubr.msk.f32.mxu0 %vm27_vm0, %v14_v5  ;;  %v116_v8 = vld [vmem:[%s193_s2] ss:$0 sm:$0xff] }
   0x4   :  { %137 = vmatprep.subr.bf16.mxu0 %v136_v3 }
   0x5   :  { %139 = vmatpush3.bf16.msra.mxu0 %v136_v3 }
   0x6   :  { %141 = vmatprep.subr.bf16.mxu0 %v140_v6 }
   0x9   :  { %143 = vmatpush3.bf16.msra.mxu0 %v140_v6 }
   0xc   :  { %134 = vmatmul.mubr.msk.f32.vlgmr.msra.gmra.mrb[0].mxu0 %vm27_vm0, %v15_v7 }
  0xdf   :  { %v135_v9 = vpop.f32.mrb[0].mxu0 }
  0xe0   :  { %v106_v10 = vadd.f32 %v135_v9, %v116_v8  ;;  %v100_v11 = vpop.f32.mrb[1].mxu0 }
  0xe1   :  { %v101_v12 = vadd.f32 %v116_v8, %v100_v11 }
  0xe2   :  { %111 = vst.msk [vmem:[%s194_s3 + $0x8] sm:$0xff] %vm109_vm1, %v106_v10 }
  0xe3   :  { %110 = vst.msk [vmem:[%s194_s3] sm:$0xff] %vm109_vm1, %v101_v12 }

</bundles_post_ra>
